<compile_context>
chip_gen: v7x
topology: tpu7x:2x2x1
jax: 0.10.0
libtpu: 0.0.40
codegen_flags: <defaults>
</compile_context>

<pallas_src>
import functools
import re

import jax
import jax.numpy as jnp
from jax import lax
from jax.experimental import pallas as pl
from jax.experimental.pallas import tpu as pltpu


# ----------------------------------------------------------------------------
# Kernel
# ----------------------------------------------------------------------------
def _mm(lhs, rhs, dimension_numbers):
    """MXU matmul with f32 accumulation; promotes mixed operand dtypes."""
    ct = jnp.promote_types(lhs.dtype, rhs.dtype)
    return lax.dot_general(lhs.astype(ct), rhs.astype(ct), dimension_numbers,
                           preferred_element_type=jnp.float32)


def critic_kernel(x_ref, w1_ref, b1_ref, w2_ref, b2_ref, w3_ref, b3_ref, o_ref,
                  *, act_dtype):
    # x:  (TB, dim_obs)  -- obs in its native layout (batch on sublanes at load)
    # w1: (H, dim_obs)   b1: (H, 1)
    # w2: (H, H)         b2: (H, 1)
    # w3: (H, 1)         b3: (1, 1)
    # o:  (1, TB)        -- batch on lanes -> lane-dense output store
    x = x_ref[...]

    # Layer 1: contract dim_obs of BOTH operands: (H, d) x (TB, d) -> (H, TB).
    # The MXU does the orientation flip; no wrapper transpose / XLU transpose.
    pre1 = _mm(w1_ref[...], x, (((1,), (1,)), ((), ())))            # (H, TB) f32
    h1 = jnp.tanh(pre1.astype(act_dtype) + b1_ref[...].astype(act_dtype))

    # Layer 2: (H, H) x (H, TB) -> (H, TB).
    pre2 = _mm(w2_ref[...], h1, (((1,), (0,)), ((), ())))           # (H, TB) f32
    h2 = jnp.tanh(pre2.astype(act_dtype) + b2_ref[...].astype(act_dtype))

    # Layer 3 (H -> 1): VPU multiply + XLU sublane reduction (an MXU matmul
    # here would have a single useful output column).
    v = jnp.sum(h2.astype(jnp.float32) * w3_ref[...], axis=0, keepdims=True)
    o_ref[...] = (v + b3_ref[...]).astype(o_ref.dtype)


# ----------------------------------------------------------------------------
# Tile / dtype selection helpers
# ----------------------------------------------------------------------------
def _round_down_128(x):
    return max(128, (int(x) // 128) * 128)


def _round_up_128(x):
    return ((int(x) + 127) // 128) * 128


def _max_batch_tile(dim_obs, hidden, obs_itemsize, vmem_limit_bytes):
    """Largest lane-aligned batch tile whose live VMEM fits the budget."""
    per_elem = (2 * dim_obs * obs_itemsize   # obs tile, double-buffered
                + 2 * hidden * 4             # h1/h2 temporaries (f32 accum)
                + 2 * 4)                     # output tile, double-buffered
    budget = vmem_limit_bytes // 2           # headroom: weights + compiler scratch
    return _round_down_128(budget // per_elem)


def _choose_batch_tile(B, tile_b, dim_obs, hidden, obs_itemsize, vmem_limit_bytes):
    cap = min(_round_down_128(tile_b),
              _max_batch_tile(dim_obs, hidden, obs_itemsize, vmem_limit_bytes))
    if B <= 256:
        # Tiny batch: single block (full-extent sublane dim is always legal).
        return min(B, cap)
    # Lane-aligned tile, capped by VMEM / tile_b, and never larger than ~B/2 so
    # the grid keeps >= 2 steps (lets the batch axis shard across both v7x TCs;
    # one extra ~0.35 us step is noise on v5e/v6e).
    return min(cap, _round_up_128(pl.cdiv(B, 2)))


def _default_act_dtype(use_bf16):
    """bf16 bias-add + tanh on chips with a bf16 VPU/EUP (>= v6); f32 otherwise."""
    if not use_bf16:
        return jnp.float32
    try:
        kind = jax.devices()[0].device_kind   # e.g. "TPU v5 lite", "TPU v6e", "TPU7x"
        m = re.search(r"(\d+)", kind)
        gen = int(m.group(1)) if m else 0
    except Exception:
        gen = 0
    return jnp.bfloat16 if gen >= 6 else jnp.float32


# ----------------------------------------------------------------------------
# Forward wrapper
# ----------------------------------------------------------------------------
def critic_forward(obs, params, *, tile_b=32768, use_bf16=False, act_dtype=None,
                   vmem_limit_bytes=32 * 1024 * 1024):
    """Fused 3-layer critic MLP, batch-tiled over a 1-D Pallas grid.

    obs: (B, dim_obs) float32 (or bfloat16 if stored upstream as bf16).
    Returns (B, 1) float32 (PyTorch semantics).
    """
    w1, b1, w2, b2, w3, b3 = params
    assert obs.ndim == 2
    B, dim_obs = obs.shape
    H = w1.shape[0]

    if act_dtype is None:
        act_dtype = _default_act_dtype(use_bf16)

    # Weights are tiny -> downcasting them is free.  obs is deliberately NOT
    # cast here: a wrapper-side cast would add a full extra HBM pass over the
    # only large operand.  Feed bf16 obs from upstream storage (e.g. on v5e)
    # if you want the obs DMA halved.
    if use_bf16:
        w1 = w1.astype(jnp.bfloat16)
        w2 = w2.astype(jnp.bfloat16)

    b1_col = b1.reshape(-1, 1).astype(jnp.float32)    # (H, 1)
    b2_col = b2.reshape(-1, 1).astype(jnp.float32)    # (H, 1)
    w3_col = w3.reshape(-1, 1).astype(jnp.float32)    # (H, 1)
    b3_2d = b3.reshape(1, 1).astype(jnp.float32)      # (1, 1)

    tb = _choose_batch_tile(B, tile_b, dim_obs, H, obs.dtype.itemsize,
                            vmem_limit_bytes)
    grid_b = pl.cdiv(B, tb)

    const2 = lambda i: (0, 0)   # resident operands: never re-DMA'd across steps
    grid_spec = pltpu.PrefetchScalarGridSpec(
        num_scalar_prefetch=0,
        grid=(grid_b,),
        in_specs=[
            pl.BlockSpec((tb, dim_obs), lambda i: (i, 0)),   # obs streamed, raw layout
            pl.BlockSpec((H, dim_obs), const2),
            pl.BlockSpec((H, 1), const2),
            pl.BlockSpec((H, H), const2),
            pl.BlockSpec((H, 1), const2),
            pl.BlockSpec((H, 1), const2),
            pl.BlockSpec((1, 1), const2),
        ],
        out_specs=pl.BlockSpec((1, tb), lambda i: (0, i)),   # lane-dense output
    )
    # NOTE: pipeline_mode=pl.Buffered(1) on the resident weight/bias specs (and
    # Buffered(3) on obs for v7x) is a small extra win; left off here to stay
    # portable across Pallas versions (weights are only ~6 KiB anyway).

    nbytes = lambda a: int(a.size) * int(a.dtype.itemsize)
    cost = pl.CostEstimate(
        flops=2 * B * (dim_obs * H + H * H + H),
        transcendentals=2 * B * H,
        bytes_accessed=(nbytes(obs) + nbytes(w1) + nbytes(b1_col) + nbytes(w2)
                        + nbytes(b2_col) + nbytes(w3_col) + nbytes(b3_2d) + B * 4),
    )

    out = pl.pallas_call(
        functools.partial(critic_kernel, act_dtype=act_dtype),
        out_shape=jax.ShapeDtypeStruct((1, B), jnp.float32),
        grid_spec=grid_spec,
        compiler_params=pltpu.CompilerParams(
            dimension_semantics=("parallel",),   # batch axis: megacore-shardable
            vmem_limit_bytes=vmem_limit_bytes,   # tile choice is clamped against this
        ),
        cost_estimate=cost,
    )(obs, w1, b1_col, w2, b2_col, w3_col, b3_2d)

    return out.reshape(B, 1)


# ----------------------------------------------------------------------------
# Params / reference
# ----------------------------------------------------------------------------
def init_critic_params(key, dim_obs, hidden_size):
    """PyTorch nn.Linear-style init (U[-1/sqrt(fan_in), +1/sqrt(fan_in)]).

    Weights in PyTorch (out_features, in_features) layout; biases as (out,)."""
    ks = jax.random.split(key, 6)

    def uniform(k, shape, fan_in):
        bound = 1.0 / jnp.sqrt(jnp.float32(fan_in))
        return jax.random.uniform(k, shape, jnp.float32, -bound, bound)

    w1 = uniform(ks[0], (hidden_size, dim_obs), dim_obs)
    b1 = uniform(ks[1], (hidden_size,), dim_obs)
    w2 = uniform(ks[2], (hidden_size, hidden_size), hidden_size)
    b2 = uniform(ks[3], (hidden_size,), hidden_size)
    w3 = uniform(ks[4], (1, hidden_size), hidden_size)
    b3 = uniform(ks[5], (1,), hidden_size)
    return (w1, b1, w2, b2, w3, b3)


def critic_reference(obs, params):
    w1, b1, w2, b2, w3, b3 = params
    h1 = jnp.tanh(obs @ w1.T + b1.reshape(1, -1))
    h2 = jnp.tanh(h1 @ w2.T + b2.reshape(1, -1))
    return h2 @ w3.T + b3.reshape(1, 1)


# ----------------------------------------------------------------------------
# Main
# ----------------------------------------------------------------------------
if __name__ == "__main__":
    key = jax.random.PRNGKey(0)
    k_obs, k_obs2, k_params = jax.random.split(key, 3)

    dim_obs, hidden_size = 16, 32
    params = init_critic_params(k_params, dim_obs, hidden_size)

    # 1) Tiny single-block batch, pure f32.
    B = 8
    obs = jax.random.normal(k_obs, (B, dim_obs), jnp.float32)
    out = critic_forward(obs, params)
    jax.block_until_ready(out)
    ref = critic_reference(obs, params)
    assert out.shape == (B, 1), out.shape
    assert jnp.allclose(out, ref, atol=1e-4, rtol=1e-4), "f32 single-block mismatch"

    # 2) Default tiling: auto-split into >= 2 grid steps with a ragged last tile.
    B2 = 300
    obs2 = jax.random.normal(k_obs2, (B2, dim_obs), jnp.float32)
    out2 = critic_forward(obs2, params)           # tb=256 -> grid of 2 (256 + 44)
    jax.block_until_ready(out2)
    ref2 = critic_reference(obs2, params)
    assert out2.shape == (B2, 1), out2.shape
    assert jnp.allclose(out2, ref2, atol=1e-4, rtol=1e-4), "f32 auto-tile mismatch"

    # 3) Explicit small tile: 3 grid steps, ragged last tile.
    out3 = critic_forward(obs2, params, tile_b=128)
    jax.block_until_ready(out3)
    assert out3.shape == (B2, 1), out3.shape
    assert jnp.allclose(out3, ref2, atol=1e-4, rtol=1e-4), "f32 multi-tile mismatch"

    # 4) bf16 weights (+ bf16 bias-add/tanh on >= v6 chips), f32 MXU accumulation.
    out4 = critic_forward(obs2, params, use_bf16=True)
    jax.block_until_ready(out4)
    assert out4.shape == (B2, 1), out4.shape
    assert jnp.allclose(out4, ref2, atol=1e-1, rtol=1e-1), "bf16 mismatch"

    print("KERNEL_OK")
</pallas_src>

<mosaic_0001>
module attributes {stable_mosaic.version = 11 : i64} {
  func.func @critic_kernel(%arg0: i32, %arg1: memref<8x16xf32, #tpu.memory_space<vmem>>, %arg2: memref<32x16xf32, #tpu.memory_space<vmem>>, %arg3: memref<32x1xf32, #tpu.memory_space<vmem>>, %arg4: memref<32x32xf32, #tpu.memory_space<vmem>>, %arg5: memref<32x1xf32, #tpu.memory_space<vmem>>, %arg6: memref<32x1xf32, #tpu.memory_space<vmem>>, %arg7: memref<1x1xf32, #tpu.memory_space<vmem>>, %arg8: memref<1x8xf32, #tpu.memory_space<vmem>>) attributes {dimension_semantics = [#tpu.dimension_semantics<parallel>], iteration_bounds = array<i64: 1>, scalar_prefetch = 0 : i64, scratch_operands = 0 : i64, tpu.core_type = #tpu.core_type<tc>, window_params = [{transform_indices = @transform_0, window_bounds = array<i64: 8, 16>}, {pipeline_mode = #tpu.pipeline_mode<synchronous>, transform_indices = @transform_1, window_bounds = array<i64: 32, 16>}, {pipeline_mode = #tpu.pipeline_mode<synchronous>, transform_indices = @transform_2, window_bounds = array<i64: 32, 1>}, {pipeline_mode = #tpu.pipeline_mode<synchronous>, transform_indices = @transform_3, window_bounds = array<i64: 32, 32>}, {pipeline_mode = #tpu.pipeline_mode<synchronous>, transform_indices = @transform_4, window_bounds = array<i64: 32, 1>}, {pipeline_mode = #tpu.pipeline_mode<synchronous>, transform_indices = @transform_5, window_bounds = array<i64: 32, 1>}, {pipeline_mode = #tpu.pipeline_mode<synchronous>, transform_indices = @transform_6, window_bounds = array<i64: 1, 1>}, {transform_indices = @transform_7, window_bounds = array<i64: 1, 8>}]} {
    %c0 = arith.constant 0 : index
    %c0_0 = arith.constant 0 : index
    %0 = vector.load %arg1[%c0, %c0_0] : memref<8x16xf32, #tpu.memory_space<vmem>>, vector<8x16xf32>
    %c0_1 = arith.constant 0 : index
    %c0_2 = arith.constant 0 : index
    %1 = vector.load %arg2[%c0_1, %c0_2] : memref<32x16xf32, #tpu.memory_space<vmem>>, vector<32x16xf32>
    %cst = arith.constant dense<0.000000e+00> : vector<32x8xf32>
    %2 = tpu.matmul %1, %0, %cst {dimension_numbers = #tpu.dot_dimension_numbers<[1], [1], [0], [0], [0, 0, 1, 0], [], []>} : vector<32x16xf32>, vector<8x16xf32>, vector<32x8xf32> -> vector<32x8xf32>
    %c0_3 = arith.constant 0 : index
    %c0_4 = arith.constant 0 : index
    %3 = vector.load %arg3[%c0_3, %c0_4] : memref<32x1xf32, #tpu.memory_space<vmem>>, vector<32x1xf32>
    %4 = vector.broadcast %3 : vector<32x1xf32> to vector<32x8xf32>
    %5 = arith.addf %2, %4 : vector<32x8xf32>
    %6 = math.tanh %5 : vector<32x8xf32>
    %c0_5 = arith.constant 0 : index
    %c0_6 = arith.constant 0 : index
    %7 = vector.load %arg4[%c0_5, %c0_6] : memref<32x32xf32, #tpu.memory_space<vmem>>, vector<32x32xf32>
    %cst_7 = arith.constant dense<0.000000e+00> : vector<32x8xf32>
    %8 = tpu.matmul %7, %6, %cst_7 {dimension_numbers = #tpu.dot_dimension_numbers<[1], [0], [0], [1], [0, 0, 1, 1], [], []>} : vector<32x32xf32>, vector<32x8xf32>, vector<32x8xf32> -> vector<32x8xf32>
    %c0_8 = arith.constant 0 : index
    %c0_9 = arith.constant 0 : index
    %9 = vector.load %arg5[%c0_8, %c0_9] : memref<32x1xf32, #tpu.memory_space<vmem>>, vector<32x1xf32>
    %10 = vector.broadcast %9 : vector<32x1xf32> to vector<32x8xf32>
    %11 = arith.addf %8, %10 : vector<32x8xf32>
    %12 = math.tanh %11 : vector<32x8xf32>
    %c0_10 = arith.constant 0 : index
    %c0_11 = arith.constant 0 : index
    %13 = vector.load %arg6[%c0_10, %c0_11] : memref<32x1xf32, #tpu.memory_space<vmem>>, vector<32x1xf32>
    %14 = vector.broadcast %13 : vector<32x1xf32> to vector<32x8xf32>
    %15 = arith.mulf %12, %14 : vector<32x8xf32>
    %cst_12 = arith.constant dense<0.000000e+00> : vector<8xf32>
    %16 = vector.multi_reduction <add>, %15, %cst_12 [0] : vector<32x8xf32> to vector<8xf32>
    %17 = vector.shape_cast %16 : vector<8xf32> to vector<1x8xf32>
    %c0_13 = arith.constant 0 : index
    %c0_14 = arith.constant 0 : index
    %18 = vector.load %arg7[%c0_13, %c0_14] : memref<1x1xf32, #tpu.memory_space<vmem>>, vector<1x1xf32>
    %19 = vector.broadcast %18 : vector<1x1xf32> to vector<1x8xf32>
    %20 = arith.addf %17, %19 : vector<1x8xf32>
    %c0_15 = arith.constant 0 : index
    %c0_16 = arith.constant 0 : index
    %21 = vector.load %arg8[%c0_15, %c0_16] : memref<1x8xf32, #tpu.memory_space<vmem>>, vector<1x8xf32>
    tpu.vector_store %arg8[%c0_15, %c0_16], %20 {strides = array<i32>} : memref<1x8xf32, #tpu.memory_space<vmem>>, vector<1x8xf32>,
    return
  }
  func.func @transform_0(%arg0: i32) -> (i32, i32) {
    %c0_i32 = arith.constant 0 : i32
    %c0_i32_0 = arith.constant 0 : i32
    return %arg0, %c0_i32 : i32, i32
  }
  func.func @transform_1(%arg0: i32) -> (i32, i32) {
    %c0_i32 = arith.constant 0 : i32
    %c0_i32_0 = arith.constant 0 : i32
    %c0_i32_1 = arith.constant 0 : i32
    return %c0_i32, %c0_i32_0 : i32, i32
  }
  func.func @transform_2(%arg0: i32) -> (i32, i32) {
    %c0_i32 = arith.constant 0 : i32
    %c0_i32_0 = arith.constant 0 : i32
    %c0_i32_1 = arith.constant 0 : i32
    return %c0_i32, %c0_i32_0 : i32, i32
  }
  func.func @transform_3(%arg0: i32) -> (i32, i32) {
    %c0_i32 = arith.constant 0 : i32
    %c0_i32_0 = arith.constant 0 : i32
    %c0_i32_1 = arith.constant 0 : i32
    return %c0_i32, %c0_i32_0 : i32, i32
  }
  func.func @transform_4(%arg0: i32) -> (i32, i32) {
    %c0_i32 = arith.constant 0 : i32
    %c0_i32_0 = arith.constant 0 : i32
    %c0_i32_1 = arith.constant 0 : i32
    return %c0_i32, %c0_i32_0 : i32, i32
  }
  func.func @transform_5(%arg0: i32) -> (i32, i32) {
    %c0_i32 = arith.constant 0 : i32
    %c0_i32_0 = arith.constant 0 : i32
    %c0_i32_1 = arith.constant 0 : i32
    return %c0_i32, %c0_i32_0 : i32, i32
  }
  func.func @transform_6(%arg0: i32) -> (i32, i32) {
    %c0_i32 = arith.constant 0 : i32
    %c0_i32_0 = arith.constant 0 : i32
    %c0_i32_1 = arith.constant 0 : i32
    return %c0_i32, %c0_i32_0 : i32, i32
  }
  func.func @transform_7(%arg0: i32) -> (i32, i32) {
    %c0_i32 = arith.constant 0 : i32
    %c0_i32_0 = arith.constant 0 : i32
    return %c0_i32, %arg0 : i32, i32
  }
}

</mosaic_0001>

<bundles_post_ra>
// kernel: tpu_custom_call.1
= control target key start
LH: loop header
LB: loop body
LE: loop exit
PB: predicated region body
PF: predicated region fallthrough
CT: control target
= control target key end

     0   :  { %s588_s0 = inlined_call_operand.vmem [shape: f32[8,16], index: 0, kind: input, shape index: {}]   ;;  %s589_s1 = inlined_call_operand.vmem [shape: f32[32,16], index: 1, kind: input, shape index: {}]   ;;  %s590_s2 = inlined_call_operand.vmem [shape: f32[32,1], index: 2, kind: input, shape index: {}]   ;;  %s591_s3 = inlined_call_operand.vmem [shape: f32[32,32], index: 3, kind: input, shape index: {}]   ;;  %s592_s4 = inlined_call_operand.vmem [shape: f32[32,1], index: 4, kind: input, shape index: {}]   ;;  %s593_s5 = inlined_call_operand.vmem [shape: f32[32,1], index: 5, kind: input, shape index: {}]   ;;  %s594_s6 = inlined_call_operand.<no memory space> [shape: f32[1,1], index: 6, kind: input, shape index: {}]   ;;  %s595_s7 = inlined_call_operand.hbm [shape: f32[1,8], index: 7, kind: output, shape index: {}]  }
   0x1   :  { %v12_v0 = vstv %s594_s6 }
   0x2   :  { %13 = vst [vmem:[#allocation2] sm:$0x1] %v12_v0 }
   0x3   :  { %v29_v1 = vld [vmem:[%s588_s0] sm:$0xff]  ;;  %vm58_vm0 = vcmask 130048   ;;  %v31_v4 = vld [vmem:[%s589_s1 + $0x8] sm:$0xff]  ;;  %v458_v5 = vmov 0   ;;  %v36_v6 = vld [vmem:[%s590_s2 + $0x10] sm:$0xff] }
   0x4   :  { %v30_v2 = vld [vmem:[%s589_s1] sm:$0xff]  ;;  %384 = vmatprep.subr.msk.mxu0 %vm58_vm0, %v29_v1  ;;  %416 = vset.pattern.permute.xlu0 %v458_v5  ;;  %v32_v7 = vld [vmem:[%s589_s1 + $0x10] sm:$0xff]  ;;  %v35_v8 = vld [vmem:[%s590_s2 + $0x8] sm:$0xff] }
   0x5   :  { %386 = vmatprep.mubr.msk.f32.mxu0 %vm58_vm0, %v30_v2  ;;  %v34_v3 = vld [vmem:[%s590_s2] sm:$0xff]  ;;  %385 = vmatpush3.xpose.msk.msra.mxu0 %vm58_vm0, %v29_v1  ;;  %v37_v9 = vld [vmem:[%s590_s2 + $0x18] sm:$0xff] }
   0x6   :  { %40 = vperm.xlu0 %416, %v34_v3   ;;  %417 = vset.pattern.permute.xlu1 %v458_v5  ;;  %v33_v10 = vld [vmem:[%s589_s1 + $0x18] sm:$0xff] }
   0x7   :  { %50 = vperm.xlu1 %417, %v36_v6  }
   0x8   :  { %387 = vmatmul.mubr.msk.f32.vlgmr.msra.gmra.mrb[0].mxu0 %vm58_vm0, %v31_v4 }
   0x9   :  { %389 = vmatprep.mubr.msk.f32.mxu0 %vm58_vm0, %v32_v7 }
   0xa   :  { %14 = vsyncpa [#allocation4], 0  ;;  %45 = vperm.xlu0 %416, %v35_v8   ;;  %v167_v11 = vld [vmem:[%s592_s4] sm:$0xff]  ;;  %v168_v12 = vld [vmem:[%s592_s4 + $0x8] sm:$0xff]  ;;  %vm191_vm1 = vcmask 261120   ;;  %vm321_vm2 = vcmask 64512   ;;  %v341_v8 = vlaneseq }
   0xb   :  { %55 = vperm.xlu1 %417, %v37_v9   ;;  %v169_v13 = vld [vmem:[%s592_s4 + $0x10] sm:$0xff]  ;;  %v170_v14 = vld [vmem:[%s592_s4 + $0x18] sm:$0xff]  ;;  %v293_v15 = vld [vmem:[%s593_s5] sm:$0xff]  ;;  %vm346_vm3 = vcmask 57344  }
   0xc   :  { %390 = vmatmul.mubr.msk.f32.gmra.mrb[2].mxu0 %vm58_vm0, %v33_v10  ;;  %v294_v16 = vld [vmem:[%s593_s5 + $0x8] sm:$0xff]  ;;  %v295_v17 = vld [vmem:[%s593_s5 + $0x10] sm:$0xff]  ;;  %v296_v18 = vld [vmem:[%s593_s5 + $0x18] sm:$0xff] }
   0xd   :  { %v335_v19 = vld [vmem:[#allocation2] sm:$0x1]  ;;  %v164_v39 = vld [vmem:[%s591_s3 + $0x8] sm:$0xff]  ;;  %v165_v40 = vld [vmem:[%s591_s3 + $0x10] sm:$0xff] }
   0xe   :  { %173 = vperm.xlu0 %416, %v167_v11   ;;  %v163_v20 = vld [vmem:[%s591_s3] sm:$0xff]  ;;  %v166_v41 = vld [vmem:[%s591_s3 + $0x18] sm:$0xff]  ;;  %v342_v11 = vshrl.u32 %v341_v8, 7  ;;  %s459_s3 = smov [#allocation3]  }
   0xf   :  { %178 = vperm.xlu1 %417, %v168_v12   ;;  %400 = vmatprep.mubr.msk.f32.mxu1 %vm191_vm1, %v163_v20  ;;  %s354_s14 = sshll.u32 %s459_s3, 4  ;;  %s355_s14 = int_to_ptr.vmem [resolvable:$true] %s354_s14 }
  0x10   :  { %s434_s15 = scalar_lea.vmem %s355_s14, 16  ;;  %s438_s16 = scalar_lea.vmem %s355_s14, 32 }
  0x11   :  { %p435_p0 = scmp.ne.s32.totalorder %s355_s14, %s434_s15  ;;  %p439_p1 = scmp.lt.s32.totalorder %s355_s14, %s355_s14 }
  0x12   :  { %183 = vperm.xlu0 %416, %v169_v13   ;;  %p440_p2 = scmp.lt.s32.totalorder %s438_s16, %s434_s15 }
  0x13   :  { %188 = vperm.xlu1 %417, %v170_v14   ;;  %v343_v14 = vsub.s32 0, %v342_v11 }
  0x14   :  { %p441_p3 = por %p440_p2, %p439_p1 }
  0x16   :  { %299 = vperm.xlu0 %416, %v293_v15   ;;  %p442_p4 = pnand %p441_p3, %p435_p0 }
  0x17   :  { %304 = vperm.xlu1 %417, %v294_v16  }
  0x1a   :  { %309 = vperm.xlu0 %416, %v295_v17  }
  0x1b   :  { %314 = vperm.xlu1 %417, %v296_v18  }
  0x1e   :  { %338 = vperm.xlu0 %416, %v335_v19  }
  0x85   :  { %v41_v21 = vpop.permute.xlu0 %40 }
  0x86   :  { %v51_v22 = vpop.permute.xlu1 %50 }
  0x89   :  { %v46_v23 = vpop.permute.xlu0 %45 }
  0x8a   :  { %v56_v28 = vpop.permute.xlu1 %55 }
  0x8d   :  { %v174_v43 = vpop.permute.xlu0 %173 }
  0x8e   :  { %v179_v42 = vpop.permute.xlu1 %178 }
  0x91   :  { %v184_v50 = vpop.permute.xlu0 %183 }
  0x92   :  { %v189_v48 = vpop.permute.xlu1 %188 }
  0x95   :  { %v300_v54 = vpop.permute.xlu0 %299 }
  0x96   :  { %v305_v55 = vpop.permute.xlu1 %304 }
  0x99   :  { %v310_v0 = vpop.permute.xlu0 %309 }
  0x9a   :  { %v315_v1 = vpop.permute.xlu1 %314 }
  0x9d   :  { %v339_v16 = vpop.permute.xlu0 %338 }
  0x9e   :  { %v344_v18 = vrot.slane %v339_v16, %v343_v14 }
  0xdb   :  { %v388_v24 = vpop.f32.mrb[0].mxu0 }
  0xdc   :  { %v146_v25 = vadd.f32 %v388_v24, %v46_v23  ;;  %v140_v26 = vpop.f32.mrb[1].mxu0 }
  0xdd   :  { %v141_v27 = vadd.f32 %v140_v26, %v41_v21 }
  0xde   :  { %418 = vtanh.f32 %v146_v25 }
  0xdf   :  { %420 = vtanh.f32 %v141_v27  ;;  %v391_v29 = vpop.f32.mrb[2].mxu0 }
  0xe0   :  { %v156_v30 = vadd.f32 %v391_v29, %v56_v28  ;;  %v150_v31 = vpop.f32.mrb[3].mxu0 }
  0xe1   :  { %v151_v32 = vadd.f32 %v150_v31, %v51_v22 }
  0xe2   :  { %422 = vtanh.f32 %v156_v30 }
  0xe3   :  { %424 = vtanh.f32 %v151_v32 }
  0xe8   :  { %v419_v33 = vpop.eup %418 }
  0xe9   :  { %v421_v34 = vpop.eup %420 }
  0xea   :  { %v406_v35 = vpack.c.bf16 %v419_v33, %v421_v34 }
  0xec   :  { %v423_v36 = vpop.eup %422  ;;  %407 = vmatprep.subr.bf16.mxu1 %v406_v35 }
  0xed   :  { %v425_v37 = vpop.eup %424  ;;  %409 = vmatpush3.bf16.msra.mxu1 %v406_v35 }
  0xee   :  { %v410_v38 = vpack.c.bf16 %v423_v36, %v425_v37 }
  0xf0   :  { %411 = vmatprep.subr.bf16.mxu1 %v410_v38 }
  0xf1   :  { %413 = vmatpush3.bf16.msra.mxu1 %v410_v38 }
  0xf4   :  { %401 = vmatmul.mubr.msk.f32.vlgmr.msra.gmra.mrb[0].mxu1 %vm191_vm1, %v164_v39 }
  0xf5   :  { %403 = vmatprep.mubr.msk.f32.mxu1 %vm191_vm1, %v165_v40 }
  0xf8   :  { %404 = vmatmul.mubr.msk.f32.gmra.mrb[2].mxu1 %vm191_vm1, %v166_v41 }
 0x1c7   :  { %v402_v44 = vpop.f32.mrb[0].mxu1 }
 0x1c8   :  { %v276_v45 = vadd.f32 %v402_v44, %v179_v42  ;;  %v270_v46 = vpop.f32.mrb[1].mxu1 }
 0x1c9   :  { %v271_v47 = vadd.f32 %v270_v46, %v174_v43 }
 0x1ca   :  { %426 = vtanh.f32 %v276_v45 }
 0x1cb   :  { %428 = vtanh.f32 %v271_v47  ;;  %v405_v49 = vpop.f32.mrb[2].mxu1 }
 0x1cc   :  { %v286_v51 = vadd.f32 %v405_v49, %v189_v48  ;;  %v280_v52 = vpop.f32.mrb[3].mxu1 }
 0x1cd   :  { %v281_v53 = vadd.f32 %v280_v52, %v184_v50 }
 0x1ce   :  { %430 = vtanh.f32 %v286_v51 }
 0x1cf   :  { %432 = vtanh.f32 %v281_v53 }
 0x1d4   :  { %v427_v56 = vpop.eup %426 }
 0x1d5   :  { %v429_v57 = vpop.eup %428  ;;  %v318_v58 = vmul.f32 %v427_v56, %v305_v55 }
 0x1d6   :  { %v317_v59 = vmul.f32 %v429_v57, %v300_v54 }
 0x1d7   :  { %v323_v60 = vsel %vm321_vm2, %v318_v58, 0.0 }
 0x1d8   :  { %v431_v61 = vpop.eup %430  ;;  %v322_v62 = vsel %vm321_vm2, %v317_v59, 0.0 }
 0x1d9   :  { %v433_v63 = vpop.eup %432  ;;  %v324_v2 = vadd.f32 %v323_v60, %v322_v62  ;;  %v320_v3 = vmul.f32 %v431_v61, %v315_v1 }
 0x1da   :  { %v319_v4 = vmul.f32 %v433_v63, %v310_v0 }
 0x1db   :  { %v327_v7 = vsel %vm321_vm2, %v320_v3, 0.0 }
 0x1dc   :  { %v325_v5 = vsel %vm321_vm2, %v319_v4, 0.0 }
 0x1dd   :  { %v326_v6 = vadd.f32 %v325_v5, %v324_v2 }
 0x1df   :  { %v328_v9 = vadd.f32 %v327_v7, %v326_v6 }
 0x1e1   :  { %v329_v10 = vrot.slane %v328_v9, 4 }
 0x1e3   :  { %v330_v12 = vadd.f32 %v329_v10, %v328_v9 }
 0x1e5   :  { %v331_v13 = vrot.slane %v330_v12, 2 }
 0x1e7   :  { %v332_v15 = vadd.f32 %v331_v13, %v330_v12 }
 0x1e9   :  { %v333_v17 = vrot.slane %v332_v15, 1 }
 0x1eb   :  { %v334_v19 = vadd.f32 %v333_v17, %v332_v15 }
 0x1ed   :  { %v345_v20 = vadd.f32 %v344_v18, %v334_v19 }
 0x1ef   :  { %347 = vst.msk [vmem:[#allocation3] sm:$0x1] %vm346_vm3, %v345_v20 }
 0x1f0   :  { %445 = shalt.err (!%p442_p4)
}
 0x1f1   :  { %s446_s19 = scalar_lea.hbm %s595_s7, 16 }
 0x1f2   :  { %p447_p5 = scmp.ne.s32.totalorder %s595_s7, %s446_s19  ;;  %p450_p6 = scmp.lt.u32.totalorder %s446_s19, %s595_s7 }
 0x1f4   :  { %p452_p7 = pnand %p450_p6, %p447_p5 }
 0x1f6   :  { %455 = shalt.err (!%p452_p7)
}
 0x1f7   :  { %357 = dma.vmem_to_hbm [thread:$0]  %s355_s14, 16, %s595_s7, [#allocation4]  }
 0x1f8   :  { %456 = dma.done.wait [#allocation4], 16  }
 0x1f9   :  { %457 = vsyncadd [#allocation4], 4294967280 }
 0x1fa   :  { %361 = vsyncpa [#allocation4], 1 }

</bundles_post_ra>
